<compile_context>
chip_gen: v7x
topology: tpu7x:2x2x1
jax: 0.10.0
libtpu: 0.0.40
codegen_flags: <defaults>
</compile_context>

<pallas_src>
import jax
import jax.numpy as jnp
from jax.experimental import pallas as pl
from jax.experimental.pallas import tpu as pltpu


def _round_up(x: int, m: int) -> int:
    return ((x + m - 1) // m) * m


def _pick_batch_tile(B, D, C, itemsize=4, budget_bytes=40 * 1024 * 1024, max_tb=512):
    """Largest batch tile (multiple of 8, <= max_tb) whose double-buffered
    blocks + resident W/b fit comfortably in the scoped VMEM budget."""
    tb = min(max_tb, _round_up(B, 8))
    tb = _round_up(tb, 8)
    while tb > 8:
        need = (2 * tb * D + 2 * tb * C + 2 * tb) * itemsize  # double-buffered tiles
        need += (D * C + C) * itemsize                        # resident W + b
        if need <= budget_bytes:
            break
        tb = _round_up(tb // 2, 8)
    return max(tb, 8)


def _make_rubi_kernel(question_loss_weight: float, total_batch: int):
    # question_loss_weight is baked in as a Python constant (a runtime value
    # would instead be passed as an SMEM scalar to avoid recompiles).
    inv_b = 1.0 / float(total_batch)

    def rubi_kernel(g_ref, f_ref, lab_ref, w_ref, b_ref, loss_ref):
        step = pl.program_id(0)

        @pl.when(step == 0)
        def _init():
            loss_ref[...] = jnp.zeros_like(loss_ref)

        g = g_ref[...]                                      # (TB, D)
        w = w_ref[...]                                      # (D, C)   resident
        bias = b_ref[...].astype(jnp.float32)               # (1, C)   resident

        # g_pred = fc(g_feat): MXU matmul with f32 accumulation + bias.
        g_pred = jnp.dot(g, w, preferred_element_type=jnp.float32) + bias  # (TB, C)

        f_pred = f_ref[...].astype(jnp.float32)             # (TB, C)
        logits_rubi = f_pred * jax.nn.sigmoid(g_pred)

        TB, C = g_pred.shape
        labels = lab_ref[...]                               # (TB, 1) int32

        # Mask rows beyond the true batch size (partial last tile).
        row = jax.lax.broadcasted_iota(jnp.int32, (TB, 1), 0) + step * TB
        valid = row < total_batch                           # (TB, 1) bool
        valid_f = valid.astype(jnp.float32)

        cls_idx = jax.lax.broadcasted_iota(jnp.int32, (TB, C), 1)
        onehot = (cls_idx == labels).astype(jnp.float32) * valid_f  # (TB, C)

        def ce_sum(logits):
            # Sanitize invalid rows so garbage in the padded block region can
            # never reach the reductions.
            logits = jnp.where(valid, logits, 0.0)
            m = jnp.max(logits, axis=-1, keepdims=True)
            z = logits - m
            lse = jnp.log(jnp.sum(jnp.exp(z), axis=-1, keepdims=True))   # (TB, 1)
            # sum_i CE_i = sum_i lse_i - sum_i z_{i, y_i}   (valid rows only)
            return (jnp.sum(lse * valid_f, keepdims=True)
                    - jnp.sum(onehot * z, keepdims=True))                # (1, 1)

        tile_loss = ce_sum(logits_rubi) + question_loss_weight * ce_sum(g_pred)
        loss_ref[...] += tile_loss * inv_b

    return rubi_kernel


def rubi_loss(g_feat, f_pred, labels, W, b, question_loss_weight=1.0):
    """Pallas-backed RUBi loss.

    g_feat: (B, ...) biased-branch features (flattened to (B, D))
    f_pred: (B, C)   target-network logits
    labels: (B,)     int class labels
    W:      (D, C)   fc weight (transposed vs torch's (C, D))
    b:      (C,)     fc bias
    """
    B = g_feat.shape[0]
    g2 = g_feat if g_feat.ndim == 2 else g_feat.reshape(B, -1)   # torch .view(B, -1)
    D = g2.shape[1]
    C = f_pred.shape[-1]

    labels2d = labels.reshape(B, 1)
    if labels2d.dtype != jnp.int32:
        labels2d = labels2d.astype(jnp.int32)
    b2 = b if (b.ndim == 2 and b.shape == (1, C)) else b.reshape(1, C)

    TB = _pick_batch_tile(B, D, C)
    grid = (pl.cdiv(B, TB),)
    kernel = _make_rubi_kernel(float(question_loss_weight), B)

    out = pl.pallas_call(
        kernel,
        out_shape=jax.ShapeDtypeStruct((1, 1), jnp.float32),
        grid=grid,
        in_specs=[
            pl.BlockSpec((TB, D), lambda i: (i, 0)),   # g_feat: batch-tiled, pipelined
            pl.BlockSpec((TB, C), lambda i: (i, 0)),   # f_pred: batch-tiled
            pl.BlockSpec((TB, 1), lambda i: (i, 0)),   # labels: batch-tiled
            pl.BlockSpec((D, C), lambda i: (0, 0)),    # W: VMEM-resident
            pl.BlockSpec((1, C), lambda i: (0, 0)),    # b: VMEM-resident
        ],
        out_specs=pl.BlockSpec((1, 1), lambda i: (0, 0)),   # resident accumulator
        compiler_params=pltpu.CompilerParams(
            dimension_semantics=("arbitrary",),   # reduction over batch tiles
            vmem_limit_bytes=48 * 1024 * 1024,    # fits v5e/v6e/v7x with headroom
        ),
    )(g2, f_pred, labels2d, W, b2)
    return out[0, 0]


def _reference_rubi(g_feat, f_pred, labels, W, b, question_loss_weight=1.0):
    """Plain-JAX reference for correctness check."""
    B = g_feat.shape[0]
    g = g_feat.reshape(B, -1).astype(jnp.float32)
    g_pred = g @ W.astype(jnp.float32) + b.reshape(1, -1).astype(jnp.float32)
    logits_rubi = f_pred.astype(jnp.float32) * jax.nn.sigmoid(g_pred)

    def ce(logits):
        logp = jax.nn.log_softmax(logits, axis=-1)
        return -jnp.mean(jnp.take_along_axis(logp, labels[:, None], axis=-1))

    return ce(logits_rubi) + question_loss_weight * ce(g_pred)


if __name__ == "__main__":
    # Small synthetic shapes consistent with the module defaults
    # (feat_dim=128, num_classes=10).
    B, D, C = 8, 128, 10
    key = jax.random.PRNGKey(0)
    k1, k2, k3, k4, k5, k6 = jax.random.split(key, 6)

    g_feat = jax.random.normal(k1, (B, D), dtype=jnp.float32)
    f_pred = jax.random.normal(k2, (B, C), dtype=jnp.float32)
    labels = jax.random.randint(k3, (B,), 0, C, dtype=jnp.int32)
    f_feat = jax.random.normal(k4, (B, D), dtype=jnp.float32)  # NOT USED (API compat)

    # Deterministic fc params (nn.Linear(128, 10)), stored as (D, C).
    bound = 1.0 / float(D) ** 0.5
    W = jax.random.uniform(k5, (D, C), minval=-bound, maxval=bound, dtype=jnp.float32)
    b = jax.random.uniform(k6, (C,), minval=-bound, maxval=bound, dtype=jnp.float32)

    loss = rubi_loss(g_feat, f_pred, labels, W, b, question_loss_weight=1.0)
    jax.block_until_ready(loss)

    ref = _reference_rubi(g_feat, f_pred, labels, W, b, question_loss_weight=1.0)
    assert jnp.allclose(loss, ref, rtol=1e-5, atol=1e-5), (loss, ref)

    print("KERNEL_OK")
</pallas_src>

<mosaic_0001>
module attributes {stable_mosaic.version = 11 : i64} {
  func.func @rubi_kernel(%arg0: i32, %arg1: memref<8x128xf32, #tpu.memory_space<vmem>>, %arg2: memref<8x10xf32, #tpu.memory_space<vmem>>, %arg3: memref<8x1xi32, #tpu.memory_space<vmem>>, %arg4: memref<128x10xf32, #tpu.memory_space<vmem>>, %arg5: memref<1x10xf32, #tpu.memory_space<vmem>>, %arg6: memref<1x1xf32, #tpu.memory_space<vmem>>) attributes {dimension_semantics = [#tpu.dimension_semantics<arbitrary>], iteration_bounds = array<i64: 1>, scalar_prefetch = 0 : i64, scratch_operands = 0 : i64, tpu.core_type = #tpu.core_type<tc>, window_params = [{transform_indices = @transform_0, window_bounds = array<i64: 8, 128>}, {transform_indices = @transform_1, window_bounds = array<i64: 8, 10>}, {transform_indices = @transform_2, window_bounds = array<i64: 8, 1>}, {pipeline_mode = #tpu.pipeline_mode<synchronous>, transform_indices = @transform_3, window_bounds = array<i64: 128, 10>}, {pipeline_mode = #tpu.pipeline_mode<synchronous>, transform_indices = @transform_4, window_bounds = array<i64: 1, 10>}, {pipeline_mode = #tpu.pipeline_mode<synchronous>, transform_indices = @transform_5, window_bounds = array<i64: 1, 1>}]} {
    %c0_i32 = arith.constant 0 : i32
    %0 = arith.cmpi eq, %arg0, %c0_i32 : i32
    %1 = arith.extui %0 : i1 to i32
    %c0_i32_0 = arith.constant 0 : i32
    %2 = arith.cmpi ne, %1, %c0_i32_0 : i32
    scf.if %2 {
      %cst_28 = arith.constant 0.000000e+00 : f32
      %90 = vector.broadcast %cst_28 : f32 to vector<1x1xf32>
      %c0_29 = arith.constant 0 : index
      %c0_30 = arith.constant 0 : index
      %91 = vector.load %arg6[%c0_29, %c0_30] : memref<1x1xf32, #tpu.memory_space<vmem>>, vector<1x1xf32>
      tpu.vector_store %arg6[%c0_29, %c0_30], %90 {strides = array<i32>} : memref<1x1xf32, #tpu.memory_space<vmem>>, vector<1x1xf32>,
    } else {
    }
    %c0 = arith.constant 0 : index
    %c0_1 = arith.constant 0 : index
    %3 = vector.load %arg1[%c0, %c0_1] : memref<8x128xf32, #tpu.memory_space<vmem>>, vector<8x128xf32>
    %c0_2 = arith.constant 0 : index
    %c0_3 = arith.constant 0 : index
    %4 = vector.load %arg4[%c0_2, %c0_3] : memref<128x10xf32, #tpu.memory_space<vmem>>, vector<128x10xf32>
    %c0_4 = arith.constant 0 : index
    %c0_5 = arith.constant 0 : index
    %5 = vector.load %arg5[%c0_4, %c0_5] : memref<1x10xf32, #tpu.memory_space<vmem>>, vector<1x10xf32>
    %cst = arith.constant dense<0.000000e+00> : vector<8x10xf32>
    %6 = tpu.matmul %3, %4, %cst {dimension_numbers = #tpu.dot_dimension_numbers<[1], [0], [0], [1], [0, 0, 1, 1], [], []>} : vector<8x128xf32>, vector<128x10xf32>, vector<8x10xf32> -> vector<8x10xf32>
    %7 = vector.broadcast %5 : vector<1x10xf32> to vector<8x10xf32>
    %8 = arith.addf %6, %7 : vector<8x10xf32>
    %c0_6 = arith.constant 0 : index
    %c0_7 = arith.constant 0 : index
    %9 = vector.load %arg2[%c0_6, %c0_7] : memref<8x10xf32, #tpu.memory_space<vmem>>, vector<8x10xf32>
    %10 = arith.negf %8 : vector<8x10xf32>
    %11 = math.exp %10 : vector<8x10xf32>
    %cst_8 = arith.constant 1.000000e+00 : f32
    %12 = vector.broadcast %cst_8 : f32 to vector<8x10xf32>
    %13 = arith.addf %12, %11 : vector<8x10xf32>
    %14 = arith.divf %12, %13 : vector<8x10xf32>
    %15 = arith.mulf %9, %14 : vector<8x10xf32>
    %c0_9 = arith.constant 0 : index
    %c0_10 = arith.constant 0 : index
    %16 = vector.load %arg3[%c0_9, %c0_10] : memref<8x1xi32, #tpu.memory_space<vmem>>, vector<8x1xi32>
    %17 = tpu.iota {dimensions = array<i32: 0>} : vector<8x1xi32>
    %c8_i32 = arith.constant 8 : i32
    %18 = arith.muli %arg0, %c8_i32 : i32
    %19 = vector.broadcast %18 : i32 to vector<8x1xi32>
    %20 = arith.addi %17, %19 : vector<8x1xi32>
    %c8_i32_11 = arith.constant 8 : i32
    %21 = vector.broadcast %c8_i32_11 : i32 to vector<8x1xi32>
    %22 = arith.cmpi slt, %20, %21 : vector<8x1xi32>
    %23 = arith.extui %22 : vector<8x1xi1> to vector<8x1xi32>
    %24 = arith.sitofp %23 : vector<8x1xi32> to vector<8x1xf32>
    %25 = tpu.iota {dimensions = array<i32: 1>} : vector<8x10xi32>
    %26 = vector.broadcast %16 : vector<8x1xi32> to vector<8x10xi32>
    %27 = arith.cmpi eq, %25, %26 : vector<8x10xi32>
    %28 = arith.extui %27 : vector<8x10xi1> to vector<8x10xi32>
    %29 = arith.sitofp %28 : vector<8x10xi32> to vector<8x10xf32>
    %30 = vector.broadcast %24 : vector<8x1xf32> to vector<8x10xf32>
    %31 = arith.mulf %29, %30 : vector<8x10xf32>
    %cst_12 = arith.constant 0.000000e+00 : f32
    %32 = vector.shape_cast %22 : vector<8x1xi1> to vector<8x1xi1>
    %33 = vector.broadcast %32 : vector<8x1xi1> to vector<8x10xi1>
    %34 = vector.broadcast %cst_12 : f32 to vector<8x10xf32>
    %35 = arith.select %33, %15, %34 : vector<8x10xi1>, vector<8x10xf32>
    %cst_13 = arith.constant dense<0xFF800000> : vector<8xf32>
    %36 = vector.multi_reduction <maximumf>, %35, %cst_13 [1] : vector<8x10xf32> to vector<8xf32>
    %37 = vector.shape_cast %36 : vector<8xf32> to vector<8x1xf32>
    %38 = vector.broadcast %37 : vector<8x1xf32> to vector<8x10xf32>
    %39 = arith.subf %35, %38 : vector<8x10xf32>
    %40 = math.exp %39 : vector<8x10xf32>
    %cst_14 = arith.constant dense<0.000000e+00> : vector<8xf32>
    %41 = vector.multi_reduction <add>, %40, %cst_14 [1] : vector<8x10xf32> to vector<8xf32>
    %42 = vector.shape_cast %41 : vector<8xf32> to vector<8x1xf32>
    %43 = math.log %42 : vector<8x1xf32>
    %44 = arith.mulf %43, %24 : vector<8x1xf32>
    %45 = vector.shape_cast %44 : vector<8x1xf32> to vector<1x8x1xf32>
    %cst_15 = arith.constant dense<0.000000e+00> : vector<1xf32>
    %46 = vector.multi_reduction <add>, %45, %cst_15 [1, 2] : vector<1x8x1xf32> to vector<1xf32>
    %47 = vector.shape_cast %46 : vector<1xf32> to vector<1x1x1xf32>
    %48 = vector.extract %47[0, 0, 0] : f32 from vector<1x1x1xf32>
    %49 = vector.broadcast %48 : f32 to vector<1x1xf32>
    %50 = arith.mulf %31, %39 : vector<8x10xf32>
    %51 = vector.shape_cast %50 : vector<8x10xf32> to vector<1x8x10xf32>
    %cst_16 = arith.constant dense<0.000000e+00> : vector<1xf32>
    %52 = vector.multi_reduction <add>, %51, %cst_16 [1, 2] : vector<1x8x10xf32> to vector<1xf32>
    %53 = vector.shape_cast %52 : vector<1xf32> to vector<1x1x1xf32>
    %54 = vector.extract %53[0, 0, 0] : f32 from vector<1x1x1xf32>
    %55 = vector.broadcast %54 : f32 to vector<1x1xf32>
    %56 = arith.subf %49, %55 : vector<1x1xf32>
    %cst_17 = arith.constant 0.000000e+00 : f32
    %57 = vector.shape_cast %22 : vector<8x1xi1> to vector<8x1xi1>
    %58 = vector.broadcast %57 : vector<8x1xi1> to vector<8x10xi1>
    %59 = vector.broadcast %cst_17 : f32 to vector<8x10xf32>
    %60 = arith.select %58, %8, %59 : vector<8x10xi1>, vector<8x10xf32>
    %cst_18 = arith.constant dense<0xFF800000> : vector<8xf32>
    %61 = vector.multi_reduction <maximumf>, %60, %cst_18 [1] : vector<8x10xf32> to vector<8xf32>
    %62 = vector.shape_cast %61 : vector<8xf32> to vector<8x1xf32>
    %63 = vector.broadcast %62 : vector<8x1xf32> to vector<8x10xf32>
    %64 = arith.subf %60, %63 : vector<8x10xf32>
    %65 = math.exp %64 : vector<8x10xf32>
    %cst_19 = arith.constant dense<0.000000e+00> : vector<8xf32>
    %66 = vector.multi_reduction <add>, %65, %cst_19 [1] : vector<8x10xf32> to vector<8xf32>
    %67 = vector.shape_cast %66 : vector<8xf32> to vector<8x1xf32>
    %68 = math.log %67 : vector<8x1xf32>
    %69 = arith.mulf %68, %24 : vector<8x1xf32>
    %70 = vector.shape_cast %69 : vector<8x1xf32> to vector<1x8x1xf32>
    %cst_20 = arith.constant dense<0.000000e+00> : vector<1xf32>
    %71 = vector.multi_reduction <add>, %70, %cst_20 [1, 2] : vector<1x8x1xf32> to vector<1xf32>
    %72 = vector.shape_cast %71 : vector<1xf32> to vector<1x1x1xf32>
    %73 = vector.extract %72[0, 0, 0] : f32 from vector<1x1x1xf32>
    %74 = vector.broadcast %73 : f32 to vector<1x1xf32>
    %75 = arith.mulf %31, %64 : vector<8x10xf32>
    %76 = vector.shape_cast %75 : vector<8x10xf32> to vector<1x8x10xf32>
    %cst_21 = arith.constant dense<0.000000e+00> : vector<1xf32>
    %77 = vector.multi_reduction <add>, %76, %cst_21 [1, 2] : vector<1x8x10xf32> to vector<1xf32>
    %78 = vector.shape_cast %77 : vector<1xf32> to vector<1x1x1xf32>
    %79 = vector.extract %78[0, 0, 0] : f32 from vector<1x1x1xf32>
    %80 = vector.broadcast %79 : f32 to vector<1x1xf32>
    %81 = arith.subf %74, %80 : vector<1x1xf32>
    %cst_22 = arith.constant 1.000000e+00 : f32
    %82 = vector.broadcast %cst_22 : f32 to vector<1x1xf32>
    %83 = arith.mulf %82, %81 : vector<1x1xf32>
    %84 = arith.addf %56, %83 : vector<1x1xf32>
    %c0_23 = arith.constant 0 : index
    %c0_24 = arith.constant 0 : index
    %85 = vector.load %arg6[%c0_23, %c0_24] : memref<1x1xf32, #tpu.memory_space<vmem>>, vector<1x1xf32>
    %cst_25 = arith.constant 1.250000e-01 : f32
    %86 = vector.broadcast %cst_25 : f32 to vector<1x1xf32>
    %87 = arith.mulf %84, %86 : vector<1x1xf32>
    %88 = arith.addf %85, %87 : vector<1x1xf32>
    %c0_26 = arith.constant 0 : index
    %c0_27 = arith.constant 0 : index
    %89 = vector.load %arg6[%c0_26, %c0_27] : memref<1x1xf32, #tpu.memory_space<vmem>>, vector<1x1xf32>
    tpu.vector_store %arg6[%c0_26, %c0_27], %88 {strides = array<i32>} : memref<1x1xf32, #tpu.memory_space<vmem>>, vector<1x1xf32>,
    return
  }
  func.func @transform_0(%arg0: i32) -> (i32, i32) {
    %c0_i32 = arith.constant 0 : i32
    %c0_i32_0 = arith.constant 0 : i32
    return %arg0, %c0_i32 : i32, i32
  }
  func.func @transform_1(%arg0: i32) -> (i32, i32) {
    %c0_i32 = arith.constant 0 : i32
    %c0_i32_0 = arith.constant 0 : i32
    return %arg0, %c0_i32 : i32, i32
  }
  func.func @transform_2(%arg0: i32) -> (i32, i32) {
    %c0_i32 = arith.constant 0 : i32
    %c0_i32_0 = arith.constant 0 : i32
    return %arg0, %c0_i32 : i32, i32
  }
  func.func @transform_3(%arg0: i32) -> (i32, i32) {
    %c0_i32 = arith.constant 0 : i32
    %c0_i32_0 = arith.constant 0 : i32
    %c0_i32_1 = arith.constant 0 : i32
    return %c0_i32, %c0_i32_0 : i32, i32
  }
  func.func @transform_4(%arg0: i32) -> (i32, i32) {
    %c0_i32 = arith.constant 0 : i32
    %c0_i32_0 = arith.constant 0 : i32
    %c0_i32_1 = arith.constant 0 : i32
    return %c0_i32, %c0_i32_0 : i32, i32
  }
  func.func @transform_5(%arg0: i32) -> (i32, i32) {
    %c0_i32 = arith.constant 0 : i32
    %c0_i32_0 = arith.constant 0 : i32
    %c0_i32_1 = arith.constant 0 : i32
    return %c0_i32, %c0_i32_0 : i32, i32
  }
}

</mosaic_0001>

<bundles_post_ra>
// kernel: tpu_custom_call.1
= control target key start
LH: loop header
LB: loop body
LE: loop exit
PB: predicated region body
PF: predicated region fallthrough
CT: control target
= control target key end

     0   :  { %vm25_vm0 = vcmask 0   ;;  %v373_v3 = vmov 0.0|0.0   ;;  %v374_v6 = vmov 0.0   ;;  %vm375_vm1 = vmmov 0   ;;  %s491_s0 = inlined_call_operand.vmem [shape: f32[8,128], index: 0, kind: input, shape index: {}]   ;;  %s492_s1 = inlined_call_operand.vmem [shape: f32[8,10], index: 1, kind: input, shape index: {}]   ;;  %s493_s2 = inlined_call_operand.vmem [shape: s32[8,1], index: 2, kind: input, shape index: {}]   ;;  %s494_s3 = inlined_call_operand.vmem [shape: f32[128,10], index: 3, kind: input, shape index: {}]   ;;  %s495_s4 = inlined_call_operand.vmem [shape: f32[1,10], index: 4, kind: input, shape index: {}]   ;;  %s496_s5 = inlined_call_operand.hbm [shape: f32[1,1], index: 5, kind: output, shape index: {}]  }
   0x1   :  { %v28_v0 = vld [vmem:[%s494_s3] sm:$0xff]  ;;  %v29_v1 = vld [vmem:[%s494_s3 + $0x8] sm:$0xff]  ;;  %v30_v2 = vld [vmem:[%s494_s3 + $0x10] sm:$0xff]  ;;  %299 = vmatprep.subr.bf16.mxu0 %v373_v3  ;;  %26 = vst.msk [vmem:[#allocation2] sm:$0x1] %vm25_vm0, %v374_v6  ;;  %296 = vmatprep.mubr.msk.f32.mxu0 %vm375_vm1, %v374_v6 }
   0x2   :  { %v300_v4 = vpack.c.bf16 %v29_v1, %v28_v0  ;;  %v31_v5 = vld [vmem:[%s494_s3 + $0x18] sm:$0xff]  ;;  %v32_v8 = vld [vmem:[%s494_s3 + $0x20] sm:$0xff]  ;;  %v33_v9 = vld [vmem:[%s494_s3 + $0x28] sm:$0xff] }
   0x3   :  { %v303_v7 = vpack.c.bf16 %v31_v5, %v30_v2 }
   0x4   :  { %301 = vmatpush3.bf16.msra.mxu0 %v300_v4 }
   0x5   :  { %302 = vmatprep.subr.bf16.mxu0 %v373_v3 }
   0x6   :  { %10 = vsyncpa [#allocation3], 0  ;;  %v306_v10 = vpack.c.bf16 %v33_v9, %v32_v8  ;;  %v34_v11 = vld [vmem:[%s494_s3 + $0x30] sm:$0xff]  ;;  %v35_v12 = vld [vmem:[%s494_s3 + $0x38] sm:$0xff]  ;;  %v376_v27 = vmov 0   ;;  %vm149_vm2 = vcmask 80896   ;;  %v138_v46 = vlaneseq }
   0x7   :  { %v309_v13 = vpack.c.bf16 %v35_v12, %v34_v11  ;;  %v36_v14 = vld [vmem:[%s494_s3 + $0x40] sm:$0xff]  ;;  %v37_v15 = vld [vmem:[%s494_s3 + $0x48] sm:$0xff]  ;;  %v38_v17 = vld [vmem:[%s494_s3 + $0x50] sm:$0xff]  ;;  %336 = vset.pattern.permute.xlu0 %v376_v27  ;;  %vm162_vm4 = vcmask 7168   ;;  %s377_s7 = smov [#allocation2]  }
   0x8   :  { %304 = vmatpush3.bf16.msra.mxu0 %v303_v7  ;;  %v312_v16 = vpack.c.bf16 %v37_v15, %v36_v14  ;;  %v39_v18 = vld [vmem:[%s494_s3 + $0x58] sm:$0xff]  ;;  %v40_v20 = vld [vmem:[%s494_s3 + $0x60] sm:$0xff]  ;;  %v41_v21 = vld [vmem:[%s494_s3 + $0x68] sm:$0xff]  ;;  %v139_v48 = vand.u32 127, %v138_v46  ;;  %s236_s8 = sshll.u32 %s377_s7, 4  ;;  %s237_s8 = int_to_ptr.vmem [resolvable:$true] %s236_s8 }
   0x9   :  { %305 = vmatprep.subr.bf16.mxu0 %v373_v3  ;;  %v315_v19 = vpack.c.bf16 %v39_v18, %v38_v17  ;;  %v318_v22 = vpack.c.bf16 %v41_v21, %v40_v20  ;;  %v42_v23 = vld [vmem:[%s494_s3 + $0x70] sm:$0xff]  ;;  %v43_v24 = vld [vmem:[%s494_s3 + $0x78] sm:$0xff]  ;;  %v27_v26 = vld [vmem:[%s491_s0] sm:$0xff]  ;;  %s349_s9 = scalar_lea.vmem %s237_s8, 16  ;;  %s353_s10 = scalar_lea.vmem %s237_s8, 32 }
   0xa   :  { %v321_v25 = vpack.c.bf16 %v43_v24, %v42_v23  ;;  %v244_v28 = vld [vmem:[%s495_s4] ss:$0 sm:$0xff]  ;;  %p350_p0 = scmp.ne.s32.totalorder %s237_s8, %s349_s9  ;;  %p354_p1 = scmp.lt.s32.totalorder %s237_s8, %s237_s8 }
   0xb   :  { %v121_v35 = vld [vmem:[%s492_s1] sm:$0xff]  ;;  %p355_p2 = scmp.lt.s32.totalorder %s353_s10, %s349_s9 }
   0xc   :  { %307 = vmatpush3.bf16.msra.mxu0 %v306_v10  ;;  %v129_v40 = vld [vmem:[%s493_s2] sm:$0xff] }
   0xd   :  { %308 = vmatprep.subr.bf16.mxu0 %v373_v3  ;;  %p356_p3 = por %p355_p2, %p354_p1 }
   0xf   :  { %p357_p4 = pnand %p356_p3, %p350_p0 }
  0x10   :  { %310 = vmatpush3.bf16.msra.mxu0 %v309_v13 }
  0x11   :  { %311 = vmatprep.subr.bf16.mxu0 %v373_v3 }
  0x14   :  { %313 = vmatpush3.bf16.msra.mxu0 %v312_v16 }
  0x15   :  { %314 = vmatprep.subr.bf16.mxu0 %v373_v3 }
  0x18   :  { %316 = vmatpush3.bf16.msra.mxu0 %v315_v19 }
  0x19   :  { %317 = vmatprep.subr.bf16.mxu0 %v373_v3 }
  0x1c   :  { %319 = vmatpush3.bf16.msra.mxu0 %v318_v22 }
  0x1d   :  { %320 = vmatprep.subr.bf16.mxu0 %v373_v3 }
  0x20   :  { %322 = vmatpush3.bf16.msra.mxu0 %v321_v25 }
  0x23   :  { %297 = vmatmul.mubr.f32.vlgmr.msra.gmra.mrb[0].mxu0 %v27_v26 }
  0xf6   :  { %v117_v29 = vpop.f32.mrb[0].mxu0 }
  0xf7   :  { %v118_v30 = vadd.f32 %v244_v28, %v117_v29  ;;  %v298_v31 = vpop.f32.mrb[1].mxu0 }
  0xf9   :  { %v245_v32 = vmul.f32 -1.442695, %v118_v30  ;;  %v188_v39 = vsel %vm149_vm2, %v118_v30, -inf }
  0xfb   :  { %337 = vpow2.f32 %v245_v32 }
 0x105   :  { %v338_v33 = vpop.eup %337 }
 0x106   :  { %v125_v34 = vadd.f32 1.0, %v338_v33 }
 0x108   :  { %339 = vrcp.f32 %v125_v34 }
 0x112   :  { %v340_v36 = vpop.eup %339 }
 0x113   :  { %v128_v37 = vmul.f32 %v340_v36, %v121_v35 }
 0x115   :  { %v150_v38 = vsel %vm149_vm2, %v128_v37, -inf }
 0x116   :  { %151 = vmax.xlane.f32.xlu0 %v150_v38  ;;  %v225_v38 = vld [vmem:[#allocation2] sm:$0x1] }
 0x11a   :  { %189 = vmax.xlane.f32.xlu0 %v188_v39 }
 0x130   :  { %141 = vperm.xlu0 %336, %v129_v40  }
 0x1a3   :  { %v152_v41 = vpop.xlane.xlu0 %151 }
 0x1a4   :  { %v153_v42 = vsub.f32 %v128_v37, %v152_v41 }
 0x1a6   :  { %v154_v43 = vmul.f32 1.442695, %v153_v42 }
 0x1a7   :  { %v190_v44 = vpop.xlane.xlu0 %189 }
 0x1a8   :  { %341 = vpow2.f32 %v154_v43  ;;  %v191_v45 = vsub.f32 %v118_v30, %v190_v44 }
 0x1aa   :  { %v192_v47 = vmul.f32 1.442695, %v191_v45 }
 0x1ac   :  { %343 = vpow2.f32 %v192_v47 }
 0x1af   :  { %v142_v49 = vpop.permute.xlu0 %141 }
 0x1b0   :  { %vm143_vm3 = vcmp.eq.s32.totalorder %v139_v48, %v142_v49 }
 0x1b1   :  { %v246_v50 = vsel %vm143_vm3, 1.0, %v374_v6 }
 0x1b2   :  { %v342_v51 = vpop.eup %341  ;;  %v211_v52 = vmul.f32 %v246_v50, %v191_v45  ;;  %v174_v56 = vmul.f32 %v246_v50, %v153_v42 }
 0x1b3   :  { %v156_v53 = vsel %vm149_vm2, %v342_v51, 0.0 }
 0x1b4   :  { %157 = vadd.xlane.f32.xlu1 %v156_v53  ;;  %v175_v57 = vsel %vm149_vm2, %v174_v56, 0.0  ;;  %v212_v2 = vsel %vm149_vm2, %v211_v52, 0.0 }
 0x1b6   :  { %v344_v54 = vpop.eup %343 }
 0x1b7   :  { %v194_v55 = vsel %vm149_vm2, %v344_v54, 0.0 }
 0x1b8   :  { %195 = vadd.xlane.f32.xlu1 %v194_v55 }
 0x1bc   :  { %176 = vadd.xlane.f32.xlu1 %v175_v57 }
 0x241   :  { %v158_v58 = vpop.xlane.xlu1 %157 }
 0x242   :  { %345 = vlog2.f32 %v158_v58 }
 0x245   :  { %v196_v59 = vpop.xlane.xlu1 %195 }
 0x246   :  { %347 = vlog2.f32 %v196_v59 }
 0x249   :  { %v177_v3 = vpop.xlane.xlu1 %176 }
 0x24a   :  { %v178_v4 = vrot.slane %v177_v3, 4 }
 0x24c   :  { %v346_v60 = vpop.eup %345  ;;  %v179_v5 = vadd.f32 %v178_v4, %v177_v3 }
 0x24d   :  { %v160_v0 = vmul.f32 0.6931472, %v346_v60 }
 0x24e   :  { %v180_v9 = vrot.slane %v179_v5, 2 }
 0x24f   :  { %v163_v1 = vsel %vm162_vm4, %v160_v0, 0.0 }
 0x250   :  { %v348_v61 = vpop.eup %347  ;;  %v181_v15 = vadd.f32 %v180_v9, %v179_v5 }
 0x251   :  { %v198_v62 = vmul.f32 0.6931472, %v348_v61 }
 0x252   :  { %v182_v21 = vrot.slane %v181_v15, 1 }
 0x253   :  { %v200_v63 = vsel %vm162_vm4, %v198_v62, 0.0 }
 0x254   :  { %201 = vadd.xlane.f32.xlu1 %v200_v63  ;;  %v183_v27 = vadd.f32 %v182_v21, %v181_v15 }
 0x258   :  { %164 = vadd.xlane.f32.xlu1 %v163_v1 }
 0x25c   :  { %213 = vadd.xlane.f32.xlu1 %v212_v2 }
 0x2e1   :  { %v202_v6 = vpop.xlane.xlu1 %201 }
 0x2e2   :  { %v203_v7 = vrot.slane %v202_v6, 4 }
 0x2e4   :  { %v204_v8 = vadd.f32 %v203_v7, %v202_v6 }
 0x2e5   :  { %v165_v10 = vpop.xlane.xlu1 %164 }
 0x2e6   :  { %v205_v11 = vrot.slane %v204_v8, 2  ;;  %v166_v12 = vrot.slane %v165_v10, 4 }
 0x2e8   :  { %v167_v13 = vadd.f32 %v166_v12, %v165_v10  ;;  %v206_v18 = vadd.f32 %v205_v11, %v204_v8 }
 0x2e9   :  { %v214_v14 = vpop.xlane.xlu1 %213 }
 0x2ea   :  { %v168_v16 = vrot.slane %v167_v13, 2  ;;  %v215_v17 = vrot.slane %v214_v14, 4  ;;  %v207_v24 = vrot.slane %v206_v18, 1 }
 0x2ec   :  { %v216_v19 = vadd.f32 %v215_v17, %v214_v14  ;;  %v169_v20 = vadd.f32 %v168_v16, %v167_v13  ;;  %v208_v28 = vadd.f32 %v207_v24, %v206_v18 }
 0x2ee   :  { %v217_v22 = vrot.slane %v216_v19, 2  ;;  %v170_v23 = vrot.slane %v169_v20, 1 }
 0x2f0   :  { %v218_v25 = vadd.f32 %v217_v22, %v216_v19  ;;  %v171_v26 = vadd.f32 %v170_v23, %v169_v20 }
 0x2f2   :  { %323 = vpush %v171_v26  ;;  %v219_v29 = vrot.slane %v218_v25, 1 }
 0x2f3   :  { %325 = vpush %v183_v27 }
 0x2f4   :  { %327 = vpush %v208_v28  ;;  %v220_v30 = vadd.f32 %v219_v29, %v218_v25 }
 0x2f6   :  { %329 = vpush %v220_v30 }
 0x323   :  { %s324_s1 = spop %323 }
 0x324   :  { %s326_s2 = spop %325  ;;  %v173_v31 = vstv %s324_s1 }
 0x325   :  { %s328_s30 = spop %327  ;;  %v185_v32 = vstv %s326_s2 }
 0x326   :  { %v210_v33 = vstv %s328_s30  ;;  %v186_v35 = vsub.f32 %v173_v31, %v185_v32 }
 0x327   :  { %s330_s6 = spop %329 }
 0x328   :  { %v222_v34 = vstv %s330_s6 }
 0x329   :  { %v223_v36 = vsub.f32 %v210_v33, %v222_v34 }
 0x32b   :  { %v224_v37 = vadd.f32 %v223_v36, %v186_v35 }
 0x32d   :  { %v226_v39 = vmul.f32 0.125, %v224_v37 }
 0x32f   :  { %v227_v40 = vadd.f32 %v226_v39, %v225_v38 }
 0x331   :  { %229 = vst.msk [vmem:[#allocation2] sm:$0x1] %vm25_vm0, %v227_v40 }
 0x332   :  { %360 = shalt.err (!%p357_p4)
}
 0x333   :  { %s361_s13 = scalar_lea.hbm %s496_s5, 16 }
 0x334   :  { %p362_p5 = scmp.ne.s32.totalorder %s496_s5, %s361_s13  ;;  %p365_p6 = scmp.lt.u32.totalorder %s361_s13, %s496_s5 }
 0x336   :  { %p367_p7 = pnand %p365_p6, %p362_p5 }
 0x338   :  { %370 = shalt.err (!%p367_p7)
}
 0x339   :  { %239 = dma.vmem_to_hbm [thread:$0]  %s237_s8, 16, %s496_s5, [#allocation3]  }
 0x33a   :  { %371 = dma.done.wait [#allocation3], 16  }
 0x33b   :  { %372 = vsyncadd [#allocation3], 4294967280 }
 0x33c   :  { %243 = vsyncpa [#allocation3], 1 }

</bundles_post_ra>
